<compile_context>
chip_gen: v6e
topology: v6e:2x2x1
jax: 0.10.0
libtpu: 0.0.40
codegen_flags: <defaults>
</compile_context>

<pallas_src>
import math
import functools

import jax
import jax.numpy as jnp
from jax import lax
from jax.experimental import pallas as pl
from jax.experimental.pallas import tpu as pltpu


# ----------------------------------------------------------------------------
# shared math (pure jnp: used inside the Pallas kernels and in the reference)
# ----------------------------------------------------------------------------
def _layernorm(z, gamma, beta, eps=1e-5):
    # nn.LayerNorm(d_model) default: eps=1e-5, elementwise_affine=True
    mu = jnp.mean(z, axis=-1, keepdims=True)
    zc = z - mu
    var = jnp.mean(zc * zc, axis=-1, keepdims=True)
    return zc * lax.rsqrt(var + eps) * gamma + beta


# ----------------------------------------------------------------------------
# in-kernel batched multi-head attention (single einsum over all heads)
# ----------------------------------------------------------------------------
def _mha_flat(q, k, v, num_heads):
    """q: (M, C) f32, k/v: (S, C) bf16 -> (M, C) f32.
    Heads handled by ONE batched (H, ., .) einsum pair; the 1/sqrt(head_dim)
    scale is already folded into the q projection weights on the host."""
    M, C = q.shape
    S = k.shape[0]
    dh = C // num_heads
    qh = q.astype(jnp.bfloat16).reshape(M, num_heads, dh).swapaxes(0, 1)  # (H,M,dh)
    kh = k.reshape(S, num_heads, dh).swapaxes(0, 1)                       # (H,S,dh)
    vh = v.reshape(S, num_heads, dh).swapaxes(0, 1)                       # (H,S,dh)

    s = jnp.einsum("hmd,hsd->hms", qh, kh,
                   preferred_element_type=jnp.float32)          # (H,M,S) f32
    s = s - jnp.max(s, axis=-1, keepdims=True)
    p = jnp.exp(s)
    p = p * pl.reciprocal(jnp.sum(p, axis=-1, keepdims=True), approx=True)

    o = jnp.einsum("hms,hsd->hmd", p.astype(jnp.bfloat16), vh,
                   preferred_element_type=jnp.float32)          # (H,M,dh) f32
    return o.swapaxes(0, 1).reshape(M, C)


# ----------------------------------------------------------------------------
# prologue kernel: LayerNorm2(cond) + kv_linear, computed ONCE (hoisted K / V)
# ----------------------------------------------------------------------------
def kv_prologue_kernel(cond_ref, g2_ref, b2_ref, wkv_ref, bkv_ref, k_ref, v_ref):
    C = k_ref.shape[-1]
    cn = _layernorm(cond_ref[...].astype(jnp.float32), g2_ref[...], b2_ref[...])
    kv = jnp.dot(cn.astype(jnp.bfloat16), wkv_ref[...],
                 preferred_element_type=jnp.float32) + bkv_ref[...]
    k_ref[...] = kv[:, :C].astype(k_ref.dtype)
    v_ref[...] = kv[:, C:].astype(v_ref.dtype)


# ----------------------------------------------------------------------------
# main kernel: one grid step == one tm-row tile of flattened query tokens
# ----------------------------------------------------------------------------
def mhca_kernel(
    x_ref,                                  # (TM, C) bf16 tile of queries
    k_ref, v_ref,                           # (S, C) bf16, grid-invariant
    g1_ref, b1_ref,                         # LayerNorm1 affine (f32)
    wq_ref, bq_ref,                         # q_linear (scale folded), bf16/f32
    wpd_ref, bpd_ref,                       # fused proj || de_proj, bf16/f32
    xo_ref, de_ref,                         # outputs: x, de_map (bf16)
    *, num_heads,
):
    C = xo_ref.shape[-1]

    # LayerNorm in f32 on the VPU (v5e has no bf16 VPU path).
    x = x_ref[...].astype(jnp.float32)
    xn = _layernorm(x, g1_ref[...], b1_ref[...])

    # q projection: bf16 operands on the MXU, f32 accumulation.
    q = jnp.dot(xn.astype(jnp.bfloat16), wq_ref[...],
                preferred_element_type=jnp.float32) + bq_ref[...]

    attn = _mha_flat(q, k_ref[...], v_ref[...], num_heads)     # (TM, C) f32
    a16 = attn.astype(jnp.bfloat16)

    # fused proj + de_proj: one MXU pass with N = 2C, then slice-store halves.
    out = jnp.dot(a16, wpd_ref[...], preferred_element_type=jnp.float32) + bpd_ref[...]
    xo_ref[...] = out[:, :C].astype(xo_ref.dtype)
    de_ref[...] = out[:, C:].astype(de_ref.dtype)


# ----------------------------------------------------------------------------
# pallas_call builder (single_buffer toggles pipeline_mode=pl.Buffered(1))
# ----------------------------------------------------------------------------
def _pallas_forward(xf, invariants, *, num_heads, tm, M, S, C, single_buffer):
    num_tiles = M // tm

    def tok_spec():
        return pl.BlockSpec((tm, C), lambda i: (i, 0))

    def invariant_spec(shape):
        idx = lambda i: (0,) * len(shape)
        if single_buffer:
            # grid-invariant block: single-buffer to halve resident VMEM
            return pl.BlockSpec(shape, idx, pipeline_mode=pl.Buffered(1))
        return pl.BlockSpec(shape, idx)

    # cost estimate (advisory) -- reflects the hoisted K/V (no per-tile kv work)
    flops = int(
        2 * M * C * C               # q projection
        + 2 * M * S * C * 2         # attention scores + PV
        + 2 * M * C * (2 * C)       # fused proj + de_proj
    )
    transcendentals = int(num_heads * M * S + M)
    bytes_accessed = int(
        2 * M * C                   # x streamed in (bf16)
        + 2 * 2 * M * C             # two bf16 outputs
        + sum(int(a.size) * a.dtype.itemsize for a in invariants)
    )

    kernel = functools.partial(mhca_kernel, num_heads=num_heads)
    return pl.pallas_call(
        kernel,
        grid=(num_tiles,),
        in_specs=[tok_spec()] + [invariant_spec(a.shape) for a in invariants],
        out_specs=[tok_spec(), tok_spec()],
        out_shape=(jax.ShapeDtypeStruct((M, C), jnp.bfloat16),
                   jax.ShapeDtypeStruct((M, C), jnp.bfloat16)),
        compiler_params=pltpu.CompilerParams(
            dimension_semantics=("parallel",),
            # 32 MiB fits v7x's 64 MiB VMEM with headroom; at production sizes
            # raise on v5e/v6e (128 MiB) to enable tm=512.
            vmem_limit_bytes=32 * 1024 * 1024,
        ),
        cost_estimate=pl.CostEstimate(
            flops=flops,
            transcendentals=transcendentals,
            bytes_accessed=bytes_accessed,
        ),
    )(xf, *invariants)


# ----------------------------------------------------------------------------
# wrapper
# ----------------------------------------------------------------------------
def zero_mhca_de_forward(x, cond, params, *, num_heads, tm=256):
    """forward(x, cond, mask=None) of Zero_MultiHeadCrossAttentionDe."""
    B, N, C = x.shape
    L = cond.shape[1]
    M, S = B * N, B * L
    tm = min(tm, M)
    assert C % num_heads == 0 and M % tm == 0 and C % 128 == 0

    dh = C // num_heads
    scale = 1.0 / math.sqrt(dh)

    # stream activations as bf16 (halves HBM->VMEM DMA); f32 math happens in-kernel
    xf = x.reshape(M, C).astype(jnp.bfloat16)
    cf = cond.reshape(S, C).astype(jnp.bfloat16)

    # bf16 weights for the MXU; attention scale folded into the q projection.
    wq = (params["wq"] * scale).astype(jnp.bfloat16)
    bq = (params["bq"] * scale).astype(jnp.float32)
    wkv = params["wkv"].astype(jnp.bfloat16)
    bkv = params["bkv"].astype(jnp.float32)
    # fused proj || de_proj weight/bias
    wpd = jnp.concatenate([params["wp"], params["wd"]], axis=1).astype(jnp.bfloat16)
    bpd = jnp.concatenate([params["bp"], params["bd"]], axis=1).astype(jnp.float32)
    g1 = params["g1"].astype(jnp.float32)
    b1 = params["b1"].astype(jnp.float32)
    g2 = params["g2"].astype(jnp.float32)
    b2 = params["b2"].astype(jnp.float32)

    # -------- prologue: K / V computed once, outside the token-tile grid ------
    k_bf, v_bf = pl.pallas_call(
        kv_prologue_kernel,
        out_shape=(jax.ShapeDtypeStruct((S, C), jnp.bfloat16),
                   jax.ShapeDtypeStruct((S, C), jnp.bfloat16)),
    )(cf, g2, b2, wkv, bkv)

    invariants = [k_bf, v_bf, g1, b1, wq, bq, wpd, bpd]

    # -------- main grid over the flattened (B*N) query tokens ----------------
    try:
        xo, de = _pallas_forward(xf, invariants, num_heads=num_heads, tm=tm,
                                 M=M, S=S, C=C, single_buffer=True)
        jax.block_until_ready((xo, de))
    except Exception:
        # fallback for jax versions without pipeline_mode=pl.Buffered support
        xo, de = _pallas_forward(xf, invariants, num_heads=num_heads, tm=tm,
                                 M=M, S=S, C=C, single_buffer=False)

    return xo.reshape(B, N, C), de.reshape(B, N, C)


# ----------------------------------------------------------------------------
# pure-JAX f32 reference (same math, flattened-batch attention) for validation
# ----------------------------------------------------------------------------
def reference_forward(x, cond, p, *, num_heads):
    B, N, C = x.shape
    L = cond.shape[1]
    H, dh = num_heads, C // num_heads

    q = _layernorm(x, p["g1"], p["b1"]) @ p["wq"] + p["bq"]          # (B,N,C)
    kv = _layernorm(cond, p["g2"], p["b2"]) @ p["wkv"] + p["bkv"]    # (B,L,2C)
    k, v = kv[..., :C], kv[..., C:]

    qf = q.reshape(B * N, H, dh)
    kf = k.reshape(B * L, H, dh)
    vf = v.reshape(B * L, H, dh)
    s = jnp.einsum("mhd,shd->hms", qf, kf) * (1.0 / math.sqrt(dh))
    a = jax.nn.softmax(s, axis=-1)
    o = jnp.einsum("hms,shd->mhd", a, vf).reshape(B, N, C)

    x_out = o @ p["wp"] + p["bp"]
    de_map = o @ p["wd"] + p["bd"]
    return x_out, de_map


# ----------------------------------------------------------------------------
# deterministic parameter construction (weights pre-transposed to (in, out))
# ----------------------------------------------------------------------------
def make_params(key, C):
    keys = jax.random.split(key, 12)

    def w(k_, shape):
        return (jax.random.normal(k_, shape) / math.sqrt(shape[0])).astype(jnp.float32)

    def b(k_, shape):
        return (0.02 * jax.random.normal(k_, shape)).astype(jnp.float32)

    return {
        "g1": (1.0 + 0.1 * jax.random.normal(keys[0], (1, C))).astype(jnp.float32),
        "b1": (0.05 * jax.random.normal(keys[1], (1, C))).astype(jnp.float32),
        "g2": (1.0 + 0.1 * jax.random.normal(keys[2], (1, C))).astype(jnp.float32),
        "b2": (0.05 * jax.random.normal(keys[3], (1, C))).astype(jnp.float32),
        "wq": w(keys[4], (C, C)), "bq": b(keys[5], (1, C)),
        "wkv": w(keys[6], (C, 2 * C)), "bkv": b(keys[7], (1, 2 * C)),
        # NOTE: 'proj' is zero_module-initialized in the PyTorch module; non-zero
        # randoms are used here so the kernel's hot path is actually exercised.
        "wp": w(keys[8], (C, C)), "bp": b(keys[9], (1, C)),
        "wd": w(keys[10], (C, C)), "bd": b(keys[11], (1, C)),
    }


# ----------------------------------------------------------------------------
if __name__ == "__main__":
    B, N, L = 2, 256, 64          # batch, image tokens, cond tokens
    C, HEADS = 256, 2             # d_model, num_heads (head_dim = 128)

    root = jax.random.PRNGKey(0)
    kx, kc, kp = jax.random.split(root, 3)
    x = jax.random.normal(kx, (B, N, C), dtype=jnp.float32)
    cond = jax.random.normal(kc, (B, L, C), dtype=jnp.float32)
    params = make_params(kp, C)

    # M = 512, tm = 256 -> 2 parallel grid steps (both v7x TensorCores get work)
    x_out, de_map = zero_mhca_de_forward(x, cond, params, num_heads=HEADS, tm=256)
    jax.block_until_ready((x_out, de_map))

    x_ref, de_ref = reference_forward(x, cond, params, num_heads=HEADS)
    assert x_out.shape == (B, N, C) and de_map.shape == (B, N, C)
    assert float(jnp.std(de_ref)) > 1e-3          # outputs are non-trivial
    assert jnp.allclose(x_out.astype(jnp.float32), x_ref, rtol=3e-2, atol=3e-2)
    assert jnp.allclose(de_map.astype(jnp.float32), de_ref, rtol=3e-2, atol=3e-2)

    print("KERNEL_OK")
</pallas_src>

<mosaic_0001>
module attributes {stable_mosaic.version = 11 : i64} {
  func.func @kv_prologue_kernel(%arg0: memref<128x256xbf16, #tpu.memory_space<vmem>>, %arg1: memref<1x256xf32, #tpu.memory_space<vmem>>, %arg2: memref<1x256xf32, #tpu.memory_space<vmem>>, %arg3: memref<256x512xbf16, #tpu.memory_space<vmem>>, %arg4: memref<1x512xf32, #tpu.memory_space<vmem>>, %arg5: memref<128x256xbf16, #tpu.memory_space<vmem>>, %arg6: memref<128x256xbf16, #tpu.memory_space<vmem>>) attributes {dimension_semantics = [], scalar_prefetch = 0 : i64, scratch_operands = 0 : i64, tpu.core_type = #tpu.core_type<tc>} {
    %c0 = arith.constant 0 : index
    %c0_0 = arith.constant 0 : index
    %0 = vector.load %arg0[%c0, %c0_0] : memref<128x256xbf16, #tpu.memory_space<vmem>>, vector<128x256xbf16>
    %1 = arith.extf %0 : vector<128x256xbf16> to vector<128x256xf32>
    %c0_1 = arith.constant 0 : index
    %c0_2 = arith.constant 0 : index
    %2 = vector.load %arg1[%c0_1, %c0_2] : memref<1x256xf32, #tpu.memory_space<vmem>>, vector<1x256xf32>
    %c0_3 = arith.constant 0 : index
    %c0_4 = arith.constant 0 : index
    %3 = vector.load %arg2[%c0_3, %c0_4] : memref<1x256xf32, #tpu.memory_space<vmem>>, vector<1x256xf32>
    %cst = arith.constant dense<0.000000e+00> : vector<128xf32>
    %4 = vector.multi_reduction <add>, %1, %cst [1] : vector<128x256xf32> to vector<128xf32>
    %5 = vector.shape_cast %4 : vector<128xf32> to vector<128x1xf32>
    %cst_5 = arith.constant 2.560000e+02 : f32
    %6 = vector.broadcast %cst_5 : f32 to vector<128x1xf32>
    %7 = arith.divf %5, %6 : vector<128x1xf32>
    %8 = vector.broadcast %7 : vector<128x1xf32> to vector<128x256xf32>
    %9 = arith.subf %1, %8 : vector<128x256xf32>
    %10 = arith.mulf %9, %9 : vector<128x256xf32>
    %cst_6 = arith.constant dense<0.000000e+00> : vector<128xf32>
    %11 = vector.multi_reduction <add>, %10, %cst_6 [1] : vector<128x256xf32> to vector<128xf32>
    %12 = vector.shape_cast %11 : vector<128xf32> to vector<128x1xf32>
    %cst_7 = arith.constant 2.560000e+02 : f32
    %13 = vector.broadcast %cst_7 : f32 to vector<128x1xf32>
    %14 = arith.divf %12, %13 : vector<128x1xf32>
    %cst_8 = arith.constant 9.99999974E-6 : f32
    %15 = vector.broadcast %cst_8 : f32 to vector<128x1xf32>
    %16 = arith.addf %14, %15 : vector<128x1xf32>
    %17 = math.rsqrt %16 : vector<128x1xf32>
    %18 = vector.broadcast %17 : vector<128x1xf32> to vector<128x256xf32>
    %19 = arith.mulf %9, %18 : vector<128x256xf32>
    %20 = vector.broadcast %2 : vector<1x256xf32> to vector<128x256xf32>
    %21 = arith.mulf %19, %20 : vector<128x256xf32>
    %22 = vector.broadcast %3 : vector<1x256xf32> to vector<128x256xf32>
    %23 = arith.addf %21, %22 : vector<128x256xf32>
    %24 = arith.truncf %23 : vector<128x256xf32> to vector<128x256xbf16>
    %c0_9 = arith.constant 0 : index
    %c0_10 = arith.constant 0 : index
    %25 = vector.load %arg3[%c0_9, %c0_10] : memref<256x512xbf16, #tpu.memory_space<vmem>>, vector<256x512xbf16>
    %cst_11 = arith.constant dense<0.000000e+00> : vector<128x512xf32>
    %26 = tpu.matmul %24, %25, %cst_11 {dimension_numbers = #tpu.dot_dimension_numbers<[1], [0], [0], [1], [0, 0, 1, 1], [], []>} : vector<128x256xbf16>, vector<256x512xbf16>, vector<128x512xf32> -> vector<128x512xf32>
    %c0_12 = arith.constant 0 : index
    %c0_13 = arith.constant 0 : index
    %27 = vector.load %arg4[%c0_12, %c0_13] : memref<1x512xf32, #tpu.memory_space<vmem>>, vector<1x512xf32>
    %28 = vector.broadcast %27 : vector<1x512xf32> to vector<128x512xf32>
    %29 = arith.addf %26, %28 : vector<128x512xf32>
    %30 = vector.extract_strided_slice %29 {offsets = [0, 0], sizes = [128, 256], strides = [1, 1]} : vector<128x512xf32> to vector<128x256xf32>
    %31 = arith.truncf %30 : vector<128x256xf32> to vector<128x256xbf16>
    %c0_14 = arith.constant 0 : index
    %c0_15 = arith.constant 0 : index
    %32 = vector.load %arg5[%c0_14, %c0_15] : memref<128x256xbf16, #tpu.memory_space<vmem>>, vector<128x256xbf16>
    tpu.vector_store %arg5[%c0_14, %c0_15], %31 {strides = array<i32>} : memref<128x256xbf16, #tpu.memory_space<vmem>>, vector<128x256xbf16>,
    %33 = vector.extract_strided_slice %29 {offsets = [0, 256], sizes = [128, 256], strides = [1, 1]} : vector<128x512xf32> to vector<128x256xf32>
    %34 = arith.truncf %33 : vector<128x256xf32> to vector<128x256xbf16>
    %c0_16 = arith.constant 0 : index
    %c0_17 = arith.constant 0 : index
    %35 = vector.load %arg6[%c0_16, %c0_17] : memref<128x256xbf16, #tpu.memory_space<vmem>>, vector<128x256xbf16>
    tpu.vector_store %arg6[%c0_16, %c0_17], %34 {strides = array<i32>} : memref<128x256xbf16, #tpu.memory_space<vmem>>, vector<128x256xbf16>,
    return
  }
}

</mosaic_0001>

<bundles_post_ra>
// kernel: tpu_custom_call.1
= control target key start
LH: loop header
LB: loop body
LE: loop exit
PB: predicated region body
PF: predicated region fallthrough
CT: control target
= control target key end

     0   :  { %12 = vsyncpa [#allocation3], 0  ;;  %s2321_s0 = inlined_call_operand.hbm [shape: bf16[128,256], index: 0, kind: input, shape index: {}]   ;;  %s2322_s1 = inlined_call_operand.hbm [shape: f32[1,256], index: 1, kind: input, shape index: {}]   ;;  %s2323_s2 = inlined_call_operand.vmem [shape: f32[1,256], index: 2, kind: input, shape index: {}]   ;;  %s2324_s3 = inlined_call_operand.hbm [shape: bf16[256,512], index: 3, kind: input, shape index: {}]   ;;  %s2325_s4 = inlined_call_operand.vmem [shape: f32[1,512], index: 4, kind: input, shape index: {}]   ;;  %s2326_s5 = inlined_call_operand.hbm [shape: bf16[128,256], index: 5, kind: output, shape index: {0}]   ;;  %s2327_s6 = inlined_call_operand.hbm [shape: bf16[128,256], index: 6, kind: output, shape index: {1}]  }
   0x1   :  { %13 = vsyncpa [#allocation6], 0 }
   0x2   :  { %14 = vsyncpa [#allocation4], 0 }
   0x3   :  { %15 = vsyncpa [#allocation10], 0  ;;  %s1735_s21 = smov [#allocation5]   ;;  %s1736_s23 = smov [#allocation2]  }
   0x4   :  { %s34_s22 = sshll.u32 %s1735_s21, 4  ;;  %s21_s24 = sshll.u32 %s1736_s23, 4  ;;  %s35_s22 = int_to_ptr.vmem [resolvable:$true] %s34_s22  ;;  %s22_s24 = int_to_ptr.vmem [resolvable:$true] %s21_s24 }
   0x5   :  { %s1635_s25 = scalar_lea.vmem %s35_s22, 32  ;;  %p1640_p1 = scmp.lt.s32.totalorder %s35_s22, %s35_s22 }
   0x6   :  { %p1636_p0 = scmp.ne.s32.totalorder %s35_s22, %s1635_s25  ;;  %p1641_p2 = scmp.lt.s32.totalorder %s1635_s25, %s1635_s25 }
   0x8   :  { %p1642_p3 = por %p1641_p2, %p1640_p1 }
   0xa   :  { %p1643_p4 = pnand %p1642_p3, %p1636_p0 }
   0xc   :  { %1646 = shalt.err (!%p1643_p4)
}
   0xd   :  { %37 = dma.hbm_to_vmem [thread:$0]  %s2322_s1, 32, %s35_s22, [#allocation6]  }
   0xe   :  { %s1655_s28 = scalar_lea.vmem %s22_s24, 2048  ;;  %p1660_p6 = scmp.lt.s32.totalorder %s22_s24, %s22_s24 }
   0xf   :  { %p1656_p5 = scmp.ne.s32.totalorder %s22_s24, %s1655_s28  ;;  %p1661_p7 = scmp.lt.s32.totalorder %s1655_s28, %s1655_s28 }
  0x11   :  { %p1662_p8 = por %p1661_p7, %p1660_p6 }
  0x13   :  { %p1663_p9 = pnand %p1662_p8, %p1656_p5 }
  0x15   :  { %1666 = shalt.err (!%p1663_p9)
}
  0x16   :  { %s1737_s29 = smov 128   ;;  %s1738_s30 = smov 8  }
  0x17   :  { %27 = dma.hbm_to_vmem [thread:$0]  %s2321_s0, 2048, %s22_s24, [#allocation3], %s1737_s29, %s1737_s29, %s1738_s30  }
  0x18   :  { %s1739_s9 = smov [#allocation7]  }
  0x19   :  { %s45_s10 = sshll.u32 %s1739_s9, 4  ;;  %s46_s10 = int_to_ptr.vmem [resolvable:$true] %s45_s10 }
  0x1a   :  { %s1675_s1 = scalar_lea.vmem %s46_s10, 8192  ;;  %p1680_p11 = scmp.lt.s32.totalorder %s46_s10, %s46_s10 }
  0x1b   :  { %p1676_p10 = scmp.ne.s32.totalorder %s46_s10, %s1675_s1  ;;  %p1681_p12 = scmp.lt.s32.totalorder %s1675_s1, %s1675_s1 }
  0x1d   :  { %p1682_p13 = por %p1681_p12, %p1680_p11 }
  0x1f   :  { %p1683_p0 = pnand %p1682_p13, %p1676_p10 }
  0x21   :  { %1686 = shalt.err (!%p1683_p0)
}
  0x22   :  { %s1740_s11 = smov 256   ;;  %s1741_s12 = smov 16  }
  0x23   :  { %51 = dma.hbm_to_vmem [thread:$0]  %s2324_s3, 8192, %s46_s10, [#allocation6], %s1740_s11, %s1740_s11, %s1741_s12  }
  0x24   :  { %1727 = dma.done.wait [#allocation3], 2048  }
  0x25   :  { %1728 = vsyncadd [#allocation3], 4294965248 }
  0x26   :  { %1729 = dma.done.wait [#allocation6], 8224  }
  0x27   :  { %1730 = vsyncadd [#allocation6], 4294959072  ;;  %v1791_v0 = vld [vmem:[#allocation2] sm:$0xff]  ;;  %v1793_v1 = vld [vmem:[#allocation2 + $0x10] sm:$0xff]  ;;  %s1743_s17 = smov [#allocation9]  }
  0x28   :  { %v1795_v2 = vld [vmem:[#allocation2 + $0x8] sm:$0xff]  ;;  %v79_v3 = vunpack.c.l.bf16 %v1791_v0  ;;  %v80_v4 = vunpack.c.h.bf16 %v1791_v0  ;;  %v83_v5 = vunpack.c.l.bf16 %v1793_v1  ;;  %v84_v6 = vunpack.c.h.bf16 %v1793_v1  ;;  %v1801_v7 = vld [vmem:[#allocation2 + $0x18] sm:$0xff]  ;;  %v1803_v8 = vld [vmem:[#allocation2 + $0x20] sm:$0xff]  ;;  %s1345_s18 = sshll.u32 %s1743_s17, 4  ;;  %s1346_s18 = int_to_ptr.vmem [resolvable:$true] %s1345_s18 }
  0x29   :  { %v81_v9 = vunpack.c.l.bf16 %v1795_v2  ;;  %v82_v10 = vunpack.c.h.bf16 %v1795_v2  ;;  %v85_v11 = vunpack.c.l.bf16 %v1801_v7  ;;  %v86_v12 = vunpack.c.h.bf16 %v1801_v7  ;;  %v1809_v13 = vld [vmem:[#allocation2 + $0x28] sm:$0xff]  ;;  %v1821_v18 = vld [vmem:[#allocation2 + $0x30] sm:$0xff]  ;;  %v1833_v23 = vld [vmem:[#allocation2 + $0x38] sm:$0xff] }
  0x2a   :  { %v113_v14 = vadd.f32 %v80_v4, %v79_v3  ;;  %v119_v15 = vadd.f32 %v84_v6, %v83_v5  ;;  %v87_v16 = vunpack.c.l.bf16 %v1803_v8  ;;  %v88_v17 = vunpack.c.h.bf16 %v1803_v8  ;;  %v1835_v24 = vld [vmem:[#allocation2 + $0x40] sm:$0xff]  ;;  %v1842_v27 = vld [vmem:[#allocation2 + $0x48] sm:$0xff]  ;;  %v1851_v32 = vld [vmem:[#allocation2 + $0x50] sm:$0xff] }
  0x2b   :  { %v116_v19 = vadd.f32 %v82_v10, %v81_v9  ;;  %v122_v20 = vadd.f32 %v86_v12, %v85_v11  ;;  %v89_v21 = vunpack.c.l.bf16 %v1809_v13  ;;  %v90_v22 = vunpack.c.h.bf16 %v1809_v13  ;;  %v1855_v35 = vld [vmem:[#allocation2 + $0x58] sm:$0xff]  ;;  %v1867_v40 = vld [vmem:[#allocation2 + $0x60] sm:$0xff]  ;;  %v1874_v43 = vld [vmem:[#allocation2 + $0x68] sm:$0xff] }
  0x2c   :  { %114 = vadd.xlane.f32.xlu0 %v113_v14  ;;  %120 = vadd.xlane.f32.xlu1 %v119_v15  ;;  %v125_v25 = vadd.f32 %v88_v17, %v87_v16  ;;  %v91_v26 = vunpack.c.l.bf16 %v1821_v18  ;;  %v92_v29 = vunpack.c.h.bf16 %v1821_v18  ;;  %v93_v30 = vunpack.c.l.bf16 %v1833_v23  ;;  %v1883_v48 = vld [vmem:[#allocation2 + $0x70] sm:$0xff]  ;;  %v1887_v51 = vld [vmem:[#allocation2 + $0x78] sm:$0xff] }
  0x2d   :  { %v128_v28 = vadd.f32 %v90_v22, %v89_v21  ;;  %v94_v31 = vunpack.c.h.bf16 %v1833_v23  ;;  %v95_v33 = vunpack.c.l.bf16 %v1835_v24  ;;  %v96_v34 = vunpack.c.h.bf16 %v1835_v24  ;;  %v1499_v14 = vld [vmem:[#allocation7 + $0xe4] ss:$16 sps:$4 sm:$0xff]   ;;  %v1501_v15 = vld [vmem:[#allocation7 + $0xec] ss:$16 sps:$4 sm:$0xff]  }
  0x2e   :  { %v131_v36 = vadd.f32 %v92_v29, %v91_v26  ;;  %v97_v38 = vunpack.c.l.bf16 %v1842_v27  ;;  %v98_v39 = vunpack.c.h.bf16 %v1842_v27  ;;  %v99_v42 = vunpack.c.l.bf16 %v1851_v32  ;;  %878 = vmatprep.subr.bf16.mxu0 %v1499_v14  ;;  %991 = vmatprep.subr.bf16.mxu1 %v1501_v15  ;;  %v1523_v14 = vld [vmem:[#allocation7 + $0x64] ss:$16 sps:$4 sm:$0xff]   ;;  %v1525_v15 = vld [vmem:[#allocation7 + $0x6c] ss:$16 sps:$4 sm:$0xff]  }
  0x2f   :  { %v134_v37 = vadd.f32 %v94_v31, %v93_v30  ;;  %v137_v41 = vadd.f32 %v96_v34, %v95_v33  ;;  %v100_v45 = vunpack.c.h.bf16 %v1851_v32  ;;  %v101_v46 = vunpack.c.l.bf16 %v1855_v35 }
  0x30   :  { %117 = vadd.xlane.f32.xlu0 %v116_v19  ;;  %123 = vadd.xlane.f32.xlu1 %v122_v20  ;;  %v140_v44 = vadd.f32 %v98_v39, %v97_v38  ;;  %v102_v47 = vunpack.c.h.bf16 %v1855_v35  ;;  %v103_v49 = vunpack.c.l.bf16 %v1867_v40  ;;  %v104_v50 = vunpack.c.h.bf16 %v1867_v40  ;;  %v1503_v19 = vld [vmem:[#allocation7 + $0xe0] ss:$16 sps:$4 sm:$0xff]   ;;  %v1504_v20 = vld [vmem:[#allocation7 + $0xe8] ss:$16 sps:$4 sm:$0xff]  }
  0x31   :  { %v143_v52 = vadd.f32 %v100_v45, %v99_v42  ;;  %v105_v54 = vunpack.c.l.bf16 %v1874_v43  ;;  %v106_v55 = vunpack.c.h.bf16 %v1874_v43  ;;  %v107_v57 = vunpack.c.l.bf16 %v1883_v48  ;;  %879 = vmatpush1.bf16.msra.mxu0 %v1503_v19  ;;  %992 = vmatpush1.bf16.msra.mxu1 %v1504_v20  ;;  %v1527_v19 = vld [vmem:[#allocation7 + $0x60] ss:$16 sps:$4 sm:$0xff]   ;;  %v1528_v20 = vld [vmem:[#allocation7 + $0x68] ss:$16 sps:$4 sm:$0xff]  }
  0x32   :  { %v146_v53 = vadd.f32 %v102_v47, %v101_v46  ;;  %v149_v56 = vadd.f32 %v104_v50, %v103_v49  ;;  %v108_v59 = vunpack.c.h.bf16 %v1883_v48  ;;  %v109_v60 = vunpack.c.l.bf16 %v1887_v51 }
  0x33   :  { %v152_v58 = vadd.f32 %v106_v55, %v105_v54  ;;  %v110_v61 = vunpack.c.h.bf16 %v1887_v51 }
  0x34   :  { %126 = vadd.xlane.f32.xlu0 %v125_v25  ;;  %129 = vadd.xlane.f32.xlu1 %v128_v28  ;;  %v155_v62 = vadd.f32 %v108_v59, %v107_v57  ;;  %v1505_v25 = vld [vmem:[#allocation7 + $0xc4] ss:$16 sps:$4 sm:$0xff]   ;;  %v1507_v28 = vld [vmem:[#allocation7 + $0xcc] ss:$16 sps:$4 sm:$0xff]  }
  0x35   :  { %v158_v63 = vadd.f32 %v110_v61, %v109_v60  ;;  %880 = vmatprep.subr.bf16.mxu0 %v1505_v25  ;;  %993 = vmatprep.subr.bf16.mxu1 %v1507_v28  ;;  %v1529_v25 = vld [vmem:[#allocation7 + $0x44] ss:$16 sps:$4 sm:$0xff]   ;;  %v1531_v28 = vld [vmem:[#allocation7 + $0x4c] ss:$16 sps:$4 sm:$0xff]  }
  0x38   :  { %132 = vadd.xlane.f32.xlu0 %v131_v36  ;;  %135 = vadd.xlane.f32.xlu1 %v134_v37  ;;  %v1509_v36 = vld [vmem:[#allocation7 + $0xc0] ss:$16 sps:$4 sm:$0xff]   ;;  %v1510_v37 = vld [vmem:[#allocation7 + $0xc8] ss:$16 sps:$4 sm:$0xff]  }
  0x39   :  { %881 = vmatpush1.bf16.msra.mxu0 %v1509_v36  ;;  %994 = vmatpush1.bf16.msra.mxu1 %v1510_v37  ;;  %v1533_v36 = vld [vmem:[#allocation7 + $0x40] ss:$16 sps:$4 sm:$0xff]   ;;  %v1534_v37 = vld [vmem:[#allocation7 + $0x48] ss:$16 sps:$4 sm:$0xff]  }
  0x3c   :  { %138 = vadd.xlane.f32.xlu0 %v137_v41  ;;  %141 = vadd.xlane.f32.xlu1 %v140_v44  ;;  %v1511_v41 = vld [vmem:[#allocation7 + $0xa4] ss:$16 sps:$4 sm:$0xff]   ;;  %v1513_v44 = vld [vmem:[#allocation7 + $0xac] ss:$16 sps:$4 sm:$0xff]  }
  0x3d   :  { %882 = vmatprep.subr.bf16.mxu0 %v1511_v41  ;;  %995 = vmatprep.subr.bf16.mxu1 %v1513_v44  ;;  %v1535_v41 = vld [vmem:[#allocation7 + $0x24] ss:$16 sps:$4 sm:$0xff]   ;;  %v1537_v44 = vld [vmem:[#allocation7 + $0x2c] ss:$16 sps:$4 sm:$0xff]  }
  0x40   :  { %144 = vadd.xlane.f32.xlu0 %v143_v52  ;;  %147 = vadd.xlane.f32.xlu1 %v146_v53  ;;  %v1515_v52 = vld [vmem:[#allocation7 + $0xa0] ss:$16 sps:$4 sm:$0xff]   ;;  %v1516_v53 = vld [vmem:[#allocation7 + $0xa8] ss:$16 sps:$4 sm:$0xff]  }
  0x41   :  { %883 = vmatpush1.bf16.msra.mxu0 %v1515_v52  ;;  %996 = vmatpush1.bf16.msra.mxu1 %v1516_v53  ;;  %v1539_v52 = vld [vmem:[#allocation7 + $0x20] ss:$16 sps:$4 sm:$0xff]   ;;  %v1540_v53 = vld [vmem:[#allocation7 + $0x28] ss:$16 sps:$4 sm:$0xff]  }
  0x44   :  { %150 = vadd.xlane.f32.xlu0 %v149_v56  ;;  %153 = vadd.xlane.f32.xlu1 %v152_v58  ;;  %v1517_v56 = vld [vmem:[#allocation7 + $0x84] ss:$16 sps:$4 sm:$0xff]   ;;  %v1519_v58 = vld [vmem:[#allocation7 + $0x8c] ss:$16 sps:$4 sm:$0xff]  }
  0x45   :  { %884 = vmatprep.subr.bf16.mxu0 %v1517_v56  ;;  %997 = vmatprep.subr.bf16.mxu1 %v1519_v58  ;;  %v1541_v56 = vld [vmem:[#allocation7 + $0x4] ss:$16 sps:$4 sm:$0xff]   ;;  %v1543_v58 = vld [vmem:[#allocation7 + $0xc] ss:$16 sps:$4 sm:$0xff]  }
  0x48   :  { %156 = vadd.xlane.f32.xlu0 %v155_v62  ;;  %159 = vadd.xlane.f32.xlu1 %v158_v63  ;;  %v1521_v62 = vld [vmem:[#allocation7 + $0x80] ss:$16 sps:$4 sm:$0xff]   ;;  %v1522_v63 = vld [vmem:[#allocation7 + $0x88] ss:$16 sps:$4 sm:$0xff]  }
  0x49   :  { %885 = vmatpush1.bf16.msra.mxu0 %v1521_v62  ;;  %998 = vmatpush1.bf16.msra.mxu1 %v1522_v63  ;;  %v1545_v62 = vld [vmem:[#allocation7] ss:$16 sps:$4 sm:$0xff]   ;;  %v1546_v63 = vld [vmem:[#allocation7 + $0x8] ss:$16 sps:$4 sm:$0xff]  }
  0x4a   :  { %886 = vmatprep.subr.bf16.mxu0 %v1523_v14  ;;  %999 = vmatprep.subr.bf16.mxu1 %v1525_v15  ;;  %v1547_v14 = vld [vmem:[#allocation7 + $0x1e4] ss:$16 sps:$4 sm:$0xff]   ;;  %v1549_v15 = vld [vmem:[#allocation7 + $0x1ec] ss:$16 sps:$4 sm:$0xff]  }
  0x4d   :  { %887 = vmatpush1.bf16.msra.mxu0 %v1527_v19  ;;  %1000 = vmatpush1.bf16.msra.mxu1 %v1528_v20 }
  0x4e   :  { %888 = vmatprep.subr.bf16.mxu0 %v1529_v25  ;;  %1001 = vmatprep.subr.bf16.mxu1 %v1531_v28 }
  0x51   :  { %889 = vmatpush1.bf16.msra.mxu0 %v1533_v36  ;;  %1002 = vmatpush1.bf16.msra.mxu1 %v1534_v37 }
  0x52   :  { %890 = vmatprep.subr.bf16.mxu0 %v1535_v41  ;;  %1003 = vmatprep.subr.bf16.mxu1 %v1537_v44 }
  0x55   :  { %891 = vmatpush1.bf16.msra.mxu0 %v1539_v52  ;;  %1004 = vmatpush1.bf16.msra.mxu1 %v1540_v53 }
  0x56   :  { %892 = vmatprep.subr.bf16.mxu0 %v1541_v56  ;;  %1005 = vmatprep.subr.bf16.mxu1 %v1543_v58 }
  0x59   :  { %893 = vmatpush1.bf16.msra.mxu0 %v1545_v62  ;;  %1006 = vmatpush1.bf16.msra.mxu1 %v1546_v63 }
  0x5a   :  { %894 = vmatprep.subr.bf16.mxu0 %v1547_v14  ;;  %1007 = vmatprep.subr.bf16.mxu1 %v1549_v15 }
  0xb5   :  { %v115_v19 = vpop.xlane.xlu0 %114  ;;  %v121_v20 = vpop.xlane.xlu1 %120 }
  0xb6   :  { %v162_v25 = vmul.f32 0.00390625, %v115_v19  ;;  %v164_v28 = vmul.f32 0.00390625, %v121_v20 }
  0xb8   :  { %v1921_v36 = vsub.f32 %v79_v3, %v162_v25  ;;  %v1925_v37 = vsub.f32 %v80_v4, %v162_v25  ;;  %v1929_v41 = vsub.f32 %v83_v5, %v164_v28  ;;  %v1933_v44 = vsub.f32 %v84_v6, %v164_v28 }
  0xb9   :  { %v118_v52 = vpop.xlane.xlu0 %117  ;;  %v124_v53 = vpop.xlane.xlu1 %123 }
  0xba   :  { %v163_v56 = vmul.f32 0.00390625, %v118_v52  ;;  %v165_v58 = vmul.f32 0.00390625, %v124_v53  ;;  %v210_v3 = vmul.f32 %v1921_v36, %v1921_v36  ;;  %v211_v0 = vmul.f32 %v1925_v37, %v1925_v37 }
  0xbb   :  { %v214_v4 = vmul.f32 %v1929_v41, %v1929_v41  ;;  %v215_v5 = vmul.f32 %v1933_v44, %v1933_v44 }
  0xbc   :  { %v1945_v1 = vsub.f32 %v81_v9, %v163_v56  ;;  %v1949_v6 = vsub.f32 %v82_v10, %v163_v56  ;;  %v1953_v62 = vsub.f32 %v85_v11, %v165_v58  ;;  %v1957_v63 = vsub.f32 %v86_v12, %v165_v58 }
  0xbd   :  { %v127_v14 = vpop.xlane.xlu0 %126  ;;  %v242_v15 = vadd.f32 %v211_v0, %v210_v3  ;;  %v130_v19 = vpop.xlane.xlu1 %129  ;;  %v248_v10 = vadd.f32 %v215_v5, %v214_v4 }
  0xbe   :  { %v166_v20 = vmul.f32 0.00390625, %v127_v14  ;;  %v167_v25 = vmul.f32 0.00390625, %v130_v19  ;;  %v212_v9 = vmul.f32 %v1945_v1, %v1945_v1  ;;  %v213_v2 = vmul.f32 %v1949_v6, %v1949_v6 }
  0xbf   :  { %243 = vadd.xlane.f32.xlu0 %v242_v15  ;;  %v216_v11 = vmul.f32 %v1953_v62, %v1953_v62  ;;  %v217_v7 = vmul.f32 %v1957_v63, %v1957_v63 }
  0xc0   :  { %v1969_v12 = vsub.f32 %v87_v16, %v166_v20  ;;  %v1973_v28 = vsub.f32 %v88_v17, %v166_v20  ;;  %v1977_v52 = vsub.f32 %v89_v21, %v167_v25  ;;  %v1981_v53 = vsub.f32 %v90_v22, %v167_v25 }
  0xc1   :  { %v133_v56 = vpop.xlane.xlu0 %132  ;;  %v245_v58 = vadd.f32 %v213_v2, %v212_v9  ;;  %v136_v3 = vpop.xlane.xlu1 %135  ;;  %v251_v17 = vadd.f32 %v217_v7, %v216_v11 }
  0xc2   :  { %v168_v0 = vmul.f32 0.00390625, %v133_v56  ;;  %v169_v4 = vmul.f32 0.00390625, %v136_v3  ;;  %v218_v16 = vmul.f32 %v1969_v12, %v1969_v12  ;;  %v219_v8 = vmul.f32 %v1973_v28, %v1973_v28 }
  0xc3   :  { %249 = vadd.xlane.f32.xlu0 %v248_v10  ;;  %246 = vadd.xlane.f32.xlu1 %v245_v58  ;;  %v220_v21 = vmul.f32 %v1977_v52, %v1977_v52  ;;  %v221_v13 = vmul.f32 %v1981_v53, %v1981_v53  ;;  %v1552_v10 = vld [vmem:[#allocation7 + $0x1e8] ss:$16 sps:$4 sm:$0xff]  }
  0xc4   :  { %v1993_v22 = vsub.f32 %v91_v26, %v168_v0  ;;  %v1997_v5 = vsub.f32 %v92_v29, %v168_v0  ;;  %v2001_v14 = vsub.f32 %v93_v30, %v169_v4  ;;  %v2005_v15 = vsub.f32 %v94_v31, %v169_v4  ;;  %v1551_v31 = vld [vmem:[#allocation7 + $0x1e0] ss:$16 sps:$4 sm:$0xff]   ;;  %1008 = vmatpush2.bf16.msra.mxu1 %v1552_v10 }
  0xc5   :  { %v139_v19 = vpop.xlane.xlu0 %138  ;;  %v254_v20 = vadd.f32 %v219_v8, %v218_v16  ;;  %v142_v25 = vpop.xlane.xlu1 %141  ;;  %v257_v29 = vadd.f32 %v221_v13, %v220_v21  ;;  %895 = vmatpush2.bf16.msra.mxu0 %v1551_v31  ;;  %v1553_v8 = vld [vmem:[#allocation7 + $0x1c4] ss:$16 sps:$4 sm:$0xff]  }
  0xc6   :  { %v170_v9 = vmul.f32 0.00390625, %v139_v19  ;;  %v171_v2 = vmul.f32 0.00390625, %v142_v25  ;;  %v222_v26 = vmul.f32 %v1993_v22, %v1993_v22  ;;  %v223_v18 = vmul.f32 %v1997_v5, %v1997_v5  ;;  %896 = vmatprep.subr.bf16.mxu0 %v1553_v8  ;;  %v1557_v25 = vld [vmem:[#allocation7 + $0x1c0] ss:$16 sps:$4 sm:$0xff]  }
  0xc7   :  { %252 = vadd.xlane.f32.xlu1 %v251_v17  ;;  %255 = vadd.xlane.f32.xlu0 %v254_v20  ;;  %v224_v30 = vmul.f32 %v2001_v14, %v2001_v14  ;;  %v225_v23 = vmul.f32 %v2005_v15, %v2005_v15 }
  0xc8   :  { %v2017_v11 = vsub.f32 %v95_v33, %v170_v9  ;;  %v2021_v7 = vsub.f32 %v96_v34, %v170_v9  ;;  %v2025_v56 = vsub.f32 %v97_v38, %v171_v2  ;;  %v2029_v58 = vsub.f32 %v98_v39, %v171_v2  ;;  %v1555_v38 = vld [vmem:[#allocation7 + $0x1cc] ss:$16 sps:$4 sm:$0xff]   ;;  %v1558_v9 = vld [vmem:[#allocation7 + $0x1c8] ss:$16 sps:$4 sm:$0xff]  }
  0xc9   :  { %v145_v3 = vpop.xlane.xlu0 %144  ;;  %v260_v0 = vadd.f32 %v223_v18, %v222_v26  ;;  %v148_v4 = vpop.xlane.xlu1 %147  ;;  %v263_v27 = vadd.f32 %v225_v23, %v224_v30  ;;  %1009 = vmatprep.subr.bf16.mxu1 %v1555_v38  ;;  %897 = vmatpush2.bf16.msra.mxu0 %v1557_v25  ;;  %v1559_v30 = vld [vmem:[#allocation7 + $0x1a4] ss:$16 sps:$4 sm:$0xff]   ;;  %v1561_v23 = vld [vmem:[#allocation7 + $0x1ac] ss:$16 sps:$4 sm:$0xff]  }
  0xca   :  { %v172_v16 = vmul.f32 0.00390625, %v145_v3  ;;  %v173_v33 = vmul.f32 0.00390625, %v148_v4  ;;  %v226_v24 = vmul.f32 %v2017_v11, %v2017_v11  ;;  %v227_v34 = vmul.f32 %v2021_v7, %v2021_v7  ;;  %1010 = vmatpush2.bf16.msra.mxu1 %v1558_v9  ;;  %v1563_v4 = vld [vmem:[#allocation7 + $0x1a0] ss:$16 sps:$4 sm:$0xff]   ;;  %898 = vmatprep.subr.bf16.mxu0 %v1559_v30  ;;  %v1565_v38 = vld [vmem:[#allocation7 + $0x184] ss:$16 sps:$4 sm:$0xff]  }
  0xcb   :  { %258 = vadd.xlane.f32.xlu1 %v257_v29  ;;  %261 = vadd.xlane.f32.xlu0 %v260_v0  ;;  %v228_v39 = vmul.f32 %v2025_v56, %v2025_v56  ;;  %v229_v17 = vmul.f32 %v2029_v58, %v2029_v58  ;;  %v1581_v30 = vld [vmem:[#allocation7 + $0x140] ss:$16 sps:$4 sm:$0xff]  }
  0xcc   :  { %v2041_v21 = vsub.f32 %v99_v42, %v172_v16  ;;  %v2045_v13 = vsub.f32 %v100_v45, %v172_v16  ;;  %v2049_v19 = vsub.f32 %v101_v46, %v173_v33  ;;  %v2053_v20 = vsub.f32 %v102_v47, %v173_v33  ;;  %v1564_v16 = vld [vmem:[#allocation7 + $0x1a8] ss:$16 sps:$4 sm:$0xff]   ;;  %1011 = vmatprep.subr.bf16.mxu1 %v1561_v23 }
  0xcd   :  { %v151_v2 = vpop.xlane.xlu0 %150  ;;  %v266_v26 = vadd.f32 %v227_v34, %v226_v24  ;;  %v154_v18 = vpop.xlane.xlu1 %153  ;;  %v269_v35 = vadd.f32 %v229_v17, %v228_v39  ;;  %899 = vmatpush2.bf16.msra.mxu0 %v1563_v4  ;;  %v1582_v23 = vld [vmem:[#allocation7 + $0x148] ss:$16 sps:$4 sm:$0xff]   ;;  %v1583_v4 = vld [vmem:[#allocation7 + $0x124] ss:$16 sps:$4 sm:$0xff]  }
  0xce   :  { %v174_v42 = vmul.f32 0.00390625, %v151_v2  ;;  %v175_v29 = vmul.f32 0.00390625, %v154_v18  ;;  %v230_v32 = vmul.f32 %v2041_v21, %v2041_v21  ;;  %v231_v45 = vmul.f32 %v2045_v13, %v2045_v13  ;;  %1012 = vmatpush2.bf16.msra.mxu1 %v1564_v16  ;;  %v1569_v2 = vld [vmem:[#allocation7 + $0x180] ss:$16 sps:$4 sm:$0xff]   ;;  %900 = vmatprep.subr.bf16.mxu0 %v1565_v38  ;;  %v1585_v16 = vld [vmem:[#allocation7 + $0x12c] ss:$16 sps:$4 sm:$0xff]  }
  0xcf   :  { %264 = vadd.xlane.f32.xlu1 %v263_v27  ;;  %267 = vadd.xlane.f32.xlu0 %v266_v26  ;;  %v232_v46 = vmul.f32 %v2049_v19, %v2049_v19  ;;  %v233_v47 = vmul.f32 %v2053_v20, %v2053_v20  ;;  %v1567_v27 = vld [vmem:[#allocation7 + $0x18c] ss:$16 sps:$4 sm:$0xff]   ;;  %v1570_v26 = vld [vmem:[#allocation7 + $0x188] ss:$16 sps:$4 sm:$0xff]  }
  0xd0   :  { %v2065_v31 = vsub.f32 %v103_v49, %v174_v42  ;;  %v2069_v10 = vsub.f32 %v104_v50, %v174_v42  ;;  %v2073_v3 = vsub.f32 %v105_v54, %v175_v29  ;;  %v2077_v0 = vsub.f32 %v106_v55, %v175_v29  ;;  %1013 = vmatprep.subr.bf16.mxu1 %v1567_v27  ;;  %v1573_v42 = vld [vmem:[#allocation7 + $0x16c] ss:$16 sps:$4 sm:$0xff]  }
  0xd1   :  { %v157_v33 = vpop.xlane.xlu0 %156  ;;  %v272_v24 = vadd.f32 %v231_v45, %v230_v32  ;;  %v160_v34 = vpop.xlane.xlu1 %159  ;;  %v275_v43 = vadd.f32 %v233_v47, %v232_v46  ;;  %901 = vmatpush2.bf16.msra.mxu0 %v1569_v2  ;;  %v1575_v32 = vld [vmem:[#allocation7 + $0x160] ss:$16 sps:$4 sm:$0xff]   ;;  %v1576_v45 = vld [vmem:[#allocation7 + $0x168] ss:$16 sps:$4 sm:$0xff]   ;;  %v1577_v46 = vld [vmem:[#allocation7 + $0x144] ss:$16 sps:$4 sm:$0xff]  }
  0xd2   :  { %v176_v49 = vmul.f32 0.00390625, %v157_v33  ;;  %v177_v8 = vmul.f32 0.00390625, %v160_v34  ;;  %v234_v40 = vmul.f32 %v2065_v31, %v2065_v31  ;;  %v235_v50 = vmul.f32 %v2069_v10, %v2069_v10  ;;  %1014 = vmatpush2.bf16.msra.mxu1 %v1570_v26  ;;  %v1579_v47 = vld [vmem:[#allocation7 + $0x14c] ss:$16 sps:$4 sm:$0xff]   ;;  %v1587_v33 = vld [vmem:[#allocation7 + $0x120] ss:$16 sps:$4 sm:$0xff]  }
  0xd3   :  { %270 = vadd.xlane.f32.xlu1 %v269_v35  ;;  %273 = vadd.xlane.f32.xlu0 %v272_v24  ;;  %v236_v54 = vmul.f32 %v2073_v3, %v2073_v3  ;;  %v237_v55 = vmul.f32 %v2077_v0, %v2077_v0  ;;  %v1588_v24 = vld [vmem:[#allocation7 + $0x128] ss:$16 sps:$4 sm:$0xff]   ;;  %v1589_v34 = vld [vmem:[#allocation7 + $0x104] ss:$16 sps:$4 sm:$0xff]   ;;  %v371_v26 = vlaneseq }
  0xd4   :  { %v2089_v39 = vsub.f32 %v107_v57, %v176_v49  ;;  %v2093_v17 = vsub.f32 %v108_v59, %v176_v49  ;;  %v2097_v25 = vsub.f32 %v109_v60, %v177_v8  ;;  %v2101_v9 = vsub.f32 %v110_v61, %v177_v8  ;;  %v1571_v61 = vld [vmem:[#allocation7 + $0x164] ss:$16 sps:$4 sm:$0xff]   ;;  %1015 = vmatprep.subr.bf16.mxu1 %v1573_v42  ;;  %v1591_v49 = vld [vmem:[#allocation7 + $0x10c] ss:$16 sps:$4 sm:$0xff]   ;;  %v1593_v8 = vld [vmem:[#allocation7 + $0x100] ss:$16 sps:$4 sm:$0xff]  }
  0xd5   :  { %v278_v18 = vadd.f32 %v235_v50, %v234_v40  ;;  %v281_v59 = vadd.f32 %v237_v55, %v236_v54  ;;  %902 = vmatprep.subr.bf16.mxu0 %v1571_v61  ;;  %v1594_v40 = vld [vmem:[#allocation7 + $0x108] ss:$16 sps:$4 sm:$0xff]   ;;  %v2111_v61 = vshrl.u32 %v371_v26, 7 }
  0xd6   :  { %v238_v57 = vmul.f32 %v2089_v39, %v2089_v39  ;;  %v239_v48 = vmul.f32 %v2093_v17, %v2093_v17  ;;  %v240_v51 = vmul.f32 %v2097_v25, %v2097_v25  ;;  %v241_v60 = vmul.f32 %v2101_v9, %v2101_v9  ;;  %903 = vmatpush2.bf16.msra.mxu0 %v1575_v32 }
  0xd7   :  { %276 = vadd.xlane.f32.xlu1 %v275_v43  ;;  %279 = vadd.xlane.f32.xlu0 %v278_v18 }
  0xd8   :  { %v284_v29 = vadd.f32 %v239_v48, %v238_v57  ;;  %v287_v35 = vadd.f32 %v241_v60, %v240_v51  ;;  %1016 = vmatpush2.bf16.msra.mxu1 %v1576_v45  ;;  %904 = vmatprep.subr.bf16.mxu0 %v1577_v46 }
  0xd9   :  { %1017 = vmatprep.subr.bf16.mxu1 %v1579_v47  ;;  %v2114_v47 = vsub.s32 0, %v2111_v61 }
  0xda   :  { %905 = vmatpush2.bf16.msra.mxu0 %v1581_v30  ;;  %v2117_v30 = vsub.s32 1, %v2111_v61 }
  0xdb   :  { %282 = vadd.xlane.f32.xlu1 %v281_v59  ;;  %285 = vadd.xlane.f32.xlu0 %v284_v29 }
  0xdc   :  { %1018 = vmatpush2.bf16.msra.mxu1 %v1582_v23  ;;  %906 = vmatprep.subr.bf16.mxu0 %v1583_v4  ;;  %v111_v4 = vld [vmem:[#allocation5] sm:$0x3] }
  0xdd   :  { %1019 = vmatprep.subr.bf16.mxu1 %v1585_v16 }
  0xde   :  { %907 = vmatpush2.bf16.msra.mxu0 %v1587_v33 }
  0xdf   :  { %288 = vadd.xlane.f32.xlu1 %v287_v35  ;;  %908 = vmatprep.subr.bf16.mxu0 %v1589_v34 }
  0xe0   :  { %1020 = vmatpush2.bf16.msra.mxu1 %v1588_v24 }
  0xe1   :  { %1021 = vmatprep.subr.bf16.mxu1 %v1591_v49 }
  0xe2   :  { %909 = vmatpush2.bf16.msra.mxu0 %v1593_v8  ;;  %v2120_v8 = vrot.slane %v111_v4, %v2114_v47 }
  0xe4   :  { %1022 = vmatpush2.bf16.msra.mxu1 %v1594_v40  ;;  %v2123_v40 = vrot.slane %v111_v4, %v2117_v30 }
 0x148   :  { %v244_v50 = vpop.xlane.xlu0 %243 }
 0x149   :  { %v290_v43 = vmul.f32 0.00390625, %v244_v50 }
 0x14b   :  { %v306_v54 = vadd.f32 1e-05, %v290_v43  ;;  %v112_v43 = vld [vmem:[%s2323_s2] sm:$0x3] }
 0x14c   :  { %v247_v55 = vpop.xlane.xlu1 %246  ;;  %v250_v38 = vpop.xlane.xlu0 %249 }
 0x14d   :  { %1595 = vrsqrt.f32 %v306_v54  ;;  %v291_v27 = vmul.f32 0.00390625, %v247_v55  ;;  %v292_v2 = vmul.f32 0.00390625, %v250_v38 }
 0x14f   :  { %v307_v18 = vadd.f32 1e-05, %v291_v27  ;;  %v308_v57 = vadd.f32 1e-05, %v292_v2 }
 0x150   :  { %v253_v48 = vpop.xlane.xlu1 %252  ;;  %v256_v59 = vpop.xlane.xlu0 %255 }
 0x151   :  { %1597 = vrsqrt.f32 %v307_v18  ;;  %v293_v51 = vmul.f32 0.00390625, %v253_v48  ;;  %v294_v60 = vmul.f32 0.00390625, %v256_v59  ;;  %v2135_v48 = vrot.slane %v112_v43, %v2117_v30 }
 0x152   :  { %1599 = vrsqrt.f32 %v308_v57  ;;  %v2132_v57 = vrot.slane %v112_v43, %v2114_v47 }
 0x153   :  { %v309_v42 = vadd.f32 1e-05, %v293_v51  ;;  %v310_v29 = vadd.f32 1e-05, %v294_v60 }
 0x154   :  { %v259_v32 = vpop.xlane.xlu1 %258  ;;  %v262_v45 = vpop.xlane.xlu0 %261 }
 0x155   :  { %1601 = vrsqrt.f32 %v309_v42  ;;  %v295_v35 = vmul.f32 0.00390625, %v259_v32  ;;  %v296_v46 = vmul.f32 0.00390625, %v262_v45 }
 0x156   :  { %1603 = vrsqrt.f32 %v310_v29 }
 0x157   :  { %v311_v23 = vadd.f32 1e-05, %v295_v35  ;;  %v312_v16 = vadd.f32 1e-05, %v296_v46 }
 0x158   :  { %v265_v33 = vpop.xlane.xlu1 %264  ;;  %v268_v49 = vpop.xlane.xlu0 %267 }
 0x159   :  { %1605 = vrsqrt.f32 %v311_v23  ;;  %v297_v24 = vmul.f32 0.00390625, %v265_v33  ;;  %v298_v27 = vmul.f32 0.00390625, %v268_v49 }
 0x15a   :  { %v1596_v34 = vpop.eup %1595  ;;  %1607 = vrsqrt.f32 %v312_v16 }
 0x15b   :  { %v313_v50 = vadd.f32 1e-05, %v297_v24  ;;  %v339_v54 = vmul.f32 %v1596_v34, %v1925_v37  ;;  %v338_v55 = vmul.f32 %v1596_v34, %v1921_v36  ;;  %v314_v32 = vadd.f32 1e-05, %v298_v27 }
 0x15c   :  { %v271_v38 = vpop.xlane.xlu1 %270  ;;  %v274_v46 = vpop.xlane.xlu0 %273 }
 0x15d   :  { %1609 = vrsqrt.f32 %v313_v50  ;;  %v299_v2 = vmul.f32 0.00390625, %v271_v38  ;;  %v382_v18 = vmul.f32 %v2123_v40, %v339_v54  ;;  %v381_v59 = vmul.f32 %v2120_v8, %v338_v55 }
 0x15e   :  { %v1598_v26 = vpop.eup %1597  ;;  %v300_v43 = vmul.f32 0.00390625, %v274_v46 }
 0x15f   :  { %v1600_v51 = vpop.eup %1599  ;;  %v315_v37 = vadd.f32 1e-05, %v299_v2  ;;  %v341_v36 = vmul.f32 %v1598_v26, %v1949_v6  ;;  %v340_v42 = vmul.f32 %v1598_v26, %v1945_v1  ;;  %v425_v23 = vadd.f32 %v2135_v48, %v382_v18 }
 0x160   :  { %v277_v60 = vpop.xlane.xlu1 %276  ;;  %v343_v29 = vmul.f32 %v1600_v51, %v1933_v44  ;;  %v424_v16 = vadd.f32 %v2132_v57, %v381_v59  ;;  %v342_v49 = vmul.f32 %v1600_v51, %v1929_v41 }
 0x161   :  { %v384_v45 = vmul.f32 %v2123_v40, %v341_v36  ;;  %v383_v4 = vmul.f32 %v2120_v8, %v340_v42  ;;  %1611 = vrsqrt.f32 %v315_v37  ;;  %v301_v33 = vmul.f32 0.00390625, %v277_v60 }
 0x162   :  { %v1602_v35 = vpop.eup %1601  ;;  %v386_v34 = vmul.f32 %v2123_v40, %v343_v29  ;;  %1613 = vrsqrt.f32 %v314_v32  ;;  %v385_v51 = vmul.f32 %v2120_v8, %v342_v49  ;;  %v316_v36 = vadd.f32 1e-05, %v300_v43  ;;  %v280_v32 = vpop.xlane.xlu0 %279 }
 0x163   :  { %v427_v6 = vadd.f32 %v2135_v48, %v384_v45  ;;  %v345_v24 = vmul.f32 %v1602_v35, %v1957_v63  ;;  %v1604_v1 = vpop.eup %1603  ;;  %v426_v44 = vadd.f32 %v2132_v57, %v383_v4  ;;  %v344_v50 = vmul.f32 %v1602_v35, %v1953_v62 }
 0x164   :  { %v317_v26 = vadd.f32 1e-05, %v301_v33  ;;  %v347_v63 = vmul.f32 %v1604_v1, %v1973_v28  ;;  %v283_v59 = vpop.xlane.xlu1 %282  ;;  %v429_v41 = vadd.f32 %v2135_v48, %v386_v34  ;;  %v346_v4 = vmul.f32 %v1604_v1, %v1969_v12 }
 0x165   :  { %v457_v54 = vpack.c.bf16 %v427_v6, %v425_v23  ;;  %v456_v38 = vpack.c.bf16 %v426_v44, %v424_v16  ;;  %v388_v27 = vmul.f32 %v2123_v40, %v345_v24  ;;  %v387_v2 = vmul.f32 %v2120_v8, %v344_v50 }
 0x166   :  { %v1606_v55 = vpop.eup %1605  ;;  %v390_v60 = vmul.f32 %v2123_v40, %v347_v63  ;;  %1615 = vrsqrt.f32 %v317_v26  ;;  %v303_v35 = vmul.f32 0.00390625, %v283_v59  ;;  %v428_v23 = vadd.f32 %v2132_v57, %v385_v51 }
 0x167   :  { %910 = vmatprep.mubr.bf16.mxu0 %v457_v54  ;;  %1023 = vmatprep.mubr.bf16.mxu1 %v457_v54  ;;  %v349_v18 = vmul.f32 %v1606_v55, %v1981_v53  ;;  %v431_v62 = vadd.f32 %v2135_v48, %v388_v27  ;;  %v1608_v37 = vpop.eup %1607  ;;  %v430_v53 = vadd.f32 %v2132_v57, %v387_v2  ;;  %1617 = vrsqrt.f32 %v316_v36 }
 0x168   :  { %911 = vmatmul.mubr.bf16.vlgmr.msra.gmra.mxu0 %v456_v38  ;;  %1024 = vmatmul.mubr.bf16.vlgmr.msra.gmra.mxu1 %v456_v38  ;;  %v348_v45 = vmul.f32 %v1606_v55, %v1977_v52  ;;  %v302_v33 = vmul.f32 0.00390625, %v280_v32  ;;  %v433_v6 = vadd.f32 %v2135_v48, %v390_v60  ;;  %v351_v24 = vmul.f32 %v1608_v37, %v1997_v5  ;;  %v289_v54 = vpop.xlane.xlu1 %288  ;;  %v286_v5 = vpop.xlane.xlu0 %285 }
 0x169   :  { %v392_v42 = vmul.f32 %v2123_v40, %v349_v18  ;;  %v459_v28 = vpack.c.bf16 %v431_v62, %v429_v41  ;;  %v458_v44 = vpack.c.bf16 %v430_v53, %v428_v23  ;;  %v319_v34 = vadd.f32 1e-05, %v303_v35 }
 0x16a   :  { %v1610_v29 = vpop.eup %1609  ;;  %v391_v52 = vmul.f32 %v2120_v8, %v348_v45  ;;  %v389_v12 = vmul.f32 %v2120_v8, %v346_v4  ;;  %v394_v1 = vmul.f32 %v2123_v40, %v351_v24  ;;  %v305_v2 = vmul.f32 0.00390625, %v289_v54 }
 0x16b   :  { %v435_v46 = vadd.f32 %v2135_v48, %v392_v42  ;;  %920 = vmatprep.mubr.bf16.mxu0 %v459_v28  ;;  %1033 = vmatprep.mubr.bf16.mxu1 %v459_v28  ;;  %v353_v16 = vmul.f32 %v1610_v29, %v2005_v15  ;;  %v318_v15 = vadd.f32 1e-05, %v302_v33  ;;  %v352_v27 = vmul.f32 %v1610_v29, %v2001_v14 }
 0x16c   :  { %v434_v38 = vadd.f32 %v2132_v57, %v391_v52  ;;  %1619 = vrsqrt.f32 %v319_v34  ;;  %v432_v18 = vadd.f32 %v2132_v57, %v389_v12  ;;  %v350_v59 = vmul.f32 %v1608_v37, %v1993_v22 }
 0x16d   :  { %v461_v49 = vpack.c.bf16 %v435_v46, %v433_v6  ;;  %v396_v50 = vmul.f32 %v2123_v40, %v353_v16  ;;  %1621 = vrsqrt.f32 %v318_v15  ;;  %v304_v41 = vmul.f32 0.00390625, %v286_v5 }
 0x16e   :  { %v1612_v43 = vpop.eup %1611  ;;  %v437_v62 = vadd.f32 %v2135_v48, %v394_v1  ;;  %v460_v36 = vpack.c.bf16 %v434_v38, %v432_v18  ;;  %v395_v60 = vmul.f32 %v2120_v8, %v352_v27  ;;  %v321_v14 = vadd.f32 1e-05, %v305_v2 }
 0x16f   :  { %v1614_v55 = vpop.eup %1613  ;;  %v439_v26 = vadd.f32 %v2135_v48, %v396_v50  ;;  %v357_v63 = vmul.f32 %v1612_v43, %v2029_v58  ;;  %v393_v58 = vmul.f32 %v2120_v8, %v350_v59  ;;  %v320_v28 = vadd.f32 1e-05, %v304_v41 }
 0x170   :  { %921 = vmatmul.mubr.bf16.gmra.mxu0 %v458_v44  ;;  %1034 = vmatmul.mubr.bf16.gmra.mxu1 %v458_v44  ;;  %v355_v51 = vmul.f32 %v1614_v55, %v2021_v7  ;;  %v438_v7 = vadd.f32 %v2132_v57, %v395_v60  ;;  %v356_v53 = vmul.f32 %v1612_v43, %v2025_v56  ;;  %1623 = vrsqrt.f32 %v321_v14 }
 0x171   :  { %930 = vmatprep.mubr.bf16.mxu0 %v461_v49  ;;  %1043 = vmatprep.mubr.bf16.mxu1 %v461_v49  ;;  %v463_v42 = vpack.c.bf16 %v439_v26, %v437_v62  ;;  %v400_v29 = vmul.f32 %v2123_v40, %v357_v63  ;;  %v436_v46 = vadd.f32 %v2132_v57, %v393_v58  ;;  %1625 = vrsqrt.f32 %v320_v28 }
 0x172   :  { %v398_v22 = vmul.f32 %v2123_v40, %v355_v51  ;;  %v354_v23 = vmul.f32 %v1614_v55, %v2017_v11  ;;  %v399_v6 = vmul.f32 %v2120_v8, %v356_v53 }
 0x173   :  { %v1616_v32 = vpop.eup %1615  ;;  %v443_v45 = vadd.f32 %v2135_v48, %v400_v29  ;;  %v462_v33 = vpack.c.bf16 %v438_v7, %v436_v46 }
 0x174   :  { %v1618_v37 = vpop.eup %1617  ;;  %v361_v35 = vmul.f32 %v1616_v32, %v2053_v20  ;;  %v441_v4 = vadd.f32 %v2135_v48, %v398_v22  ;;  %v397_v20 = vmul.f32 %v2120_v8, %v354_v23  ;;  %v442_v34 = vadd.f32 %v2132_v57, %v399_v6 }
 0x175   :  { %v359_v16 = vmul.f32 %v1618_v37, %v2045_v13  ;;  %v360_v13 = vmul.f32 %v1616_v32, %v2049_v19  ;;  %v358_v54 = vmul.f32 %v1618_v37, %v2041_v21 }
 0x176   :  { %v465_v24 = vpack.c.bf16 %v443_v45, %v441_v4  ;;  %v404_v56 = vmul.f32 %v2123_v40, %v361_v35  ;;  %v440_v43 = vadd.f32 %v2132_v57, %v397_v20  ;;  %v536_v45 = vld [vmem:[%s2325_s4] sm:$0xf]  ;;  %s1742_s4 = smov [#allocation8]  }
 0x177   :  { %v402_v11 = vmul.f32 %v2123_v40, %v359_v16  ;;  %v403_v55 = vmul.f32 %v2120_v8, %v360_v13  ;;  %v401_v19 = vmul.f32 %v2120_v8, %v358_v54  ;;  %v2236_v35 = vrot.slane %v536_v45, %v2114_v47  ;;  %s1333_s16 = sshll.u32 %s1742_s4, 4  ;;  %s1334_s16 = int_to_ptr.vmem [resolvable:$true] %s1333_s16 }
 0x178   :  { %931 = vmatmul.mubr.bf16.gmra.mxu0 %v460_v36  ;;  %1044 = vmatmul.mubr.bf16.gmra.mxu1 %v460_v36  ;;  %v447_v49 = vadd.f32 %v2135_v48, %v404_v56  ;;  %v464_v1 = vpack.c.bf16 %v442_v34, %v440_v43  ;;  %v2241_v46 = vrot.slane %v536_v45, %v2117_v30  ;;  %s1687_s19 = scalar_lea.vmem %s1334_s16, 2048  ;;  %p1692_p2 = scmp.lt.s32.totalorder %s1334_s16, %s1334_s16 }
 0x179   :  { %940 = vmatprep.mubr.bf16.mxu0 %v463_v42  ;;  %1053 = vmatprep.mubr.bf16.mxu1 %v463_v42  ;;  %v1620_v44 = vpop.eup %1619  ;;  %v445_v12 = vadd.f32 %v2135_v48, %v402_v11  ;;  %v446_v2 = vadd.f32 %v2132_v57, %v403_v55  ;;  %v444_v18 = vadd.f32 %v2132_v57, %v401_v19  ;;  %p1688_p1 = scmp.ne.s32.totalorder %s1334_s16, %s1687_s19  ;;  %p1693_p3 = scmp.lt.s32.totalorder %s1687_s19, %s1687_s19 }
 0x17a   :  { %v1622_v52 = vpop.eup %1621  ;;  %v365_v50 = vmul.f32 %v1620_v44, %v2077_v0 }
 0x17b   :  { %v363_v15 = vmul.f32 %v1622_v52, %v2069_v10  ;;  %v467_v5 = vpack.c.bf16 %v447_v49, %v445_v12  ;;  %v364_v10 = vmul.f32 %v1620_v44, %v2073_v3  ;;  %v362_v59 = vmul.f32 %v1622_v52, %v2065_v31  ;;  %p1694_p4 = por %p1693_p3, %p1692_p2 }
 0x17c   :  { %v408_v38 = vmul.f32 %v2123_v40, %v365_v50  ;;  %v466_v51 = vpack.c.bf16 %v446_v2, %v444_v18 }
 0x17d   :  { %v1624_v27 = vpop.eup %1623  ;;  %v406_v0 = vmul.f32 %v2123_v40, %v363_v15  ;;  %v407_v36 = vmul.f32 %v2120_v8, %v364_v10  ;;  %v405_v3 = vmul.f32 %v2120_v8, %v362_v59  ;;  %p1695_p5 = pnand %p1694_p4, %p1688_p1 }
 0x17e   :  { %v1626_v21 = vpop.eup %1625  ;;  %v451_v26 = vadd.f32 %v2135_v48, %v408_v38  ;;  %v369_v63 = vmul.f32 %v1624_v27, %v2101_v9  ;;  %v368_v42 = vmul.f32 %v1624_v27, %v2097_v25 }
 0x17f   :  { %v449_v41 = vadd.f32 %v2135_v48, %v406_v0  ;;  %v367_v62 = vmul.f32 %v1626_v21, %v2093_v17  ;;  %v450_v31 = vadd.f32 %v2132_v57, %v407_v36  ;;  %v448_v29 = vadd.f32 %v2132_v57, %v405_v3 }
 0x180   :  { %941 = vmatmul.mubr.bf16.gmra.mxu0 %v462_v33  ;;  %1054 = vmatmul.mubr.bf16.gmra.mxu1 %v462_v33  ;;  %v412_v14 = vmul.f32 %v2123_v40, %v369_v63  ;;  %v366_v32 = vmul.f32 %v1626_v21, %v2089_v39  ;;  %v411_v22 = vmul.f32 %v2120_v8, %v368_v42  ;;  %v548_v39 = vsub.s32 2, %v2111_v61 }
 0x181   :  { %950 = vmatprep.mubr.bf16.mxu0 %v465_v24  ;;  %1063 = vmatprep.mubr.bf16.mxu1 %v465_v24  ;;  %v469_v60 = vpack.c.bf16 %v451_v26, %v449_v41  ;;  %v410_v9 = vmul.f32 %v2123_v40, %v367_v62  ;;  %v468_v28 = vpack.c.bf16 %v450_v31, %v448_v29 }
 0x182   :  { %v455_v17 = vadd.f32 %v2135_v48, %v412_v14  ;;  %v409_v40 = vmul.f32 %v2120_v8, %v366_v32  ;;  %v454_v25 = vadd.f32 %v2132_v57, %v411_v22  ;;  %v2238_v8 = vrot.slane %v536_v45, %v548_v39 }
 0x183   :  { %v453_v58 = vadd.f32 %v2135_v48, %v410_v9  ;;  %v552_v48 = vsub.s32 3, %v2111_v61 }
 0x184   :  { %v452_v7 = vadd.f32 %v2132_v57, %v409_v40 }
 0x185   :  { %v471_v37 = vpack.c.bf16 %v455_v17, %v453_v58  ;;  %v2243_v57 = vrot.slane %v536_v45, %v552_v48 }
 0x186   :  { %v470_v53 = vpack.c.bf16 %v454_v25, %v452_v7 }
 0x188   :  { %951 = vmatmul.mubr.bf16.gmra.mxu0 %v464_v1  ;;  %1064 = vmatmul.mubr.bf16.gmra.mxu1 %v464_v1 }
 0x189   :  { %960 = vmatprep.mubr.bf16.mxu0 %v467_v5  ;;  %1073 = vmatprep.mubr.bf16.mxu1 %v467_v5 }
 0x190   :  { %961 = vmatmul.mubr.bf16.gmra.mxu0 %v466_v51  ;;  %1074 = vmatmul.mubr.bf16.gmra.mxu1 %v466_v51 }
 0x191   :  { %970 = vmatprep.mubr.bf16.mxu0 %v469_v60  ;;  %1083 = vmatprep.mubr.bf16.mxu1 %v469_v60 }
 0x198   :  { %971 = vmatmul.mubr.bf16.gmra.mxu0 %v468_v28  ;;  %1084 = vmatmul.mubr.bf16.gmra.mxu1 %v468_v28 }
 0x199   :  { %980 = vmatprep.mubr.bf16.mxu0 %v471_v37  ;;  %1093 = vmatprep.mubr.bf16.mxu1 %v471_v37 }
 0x1a0   :  { %981 = vmatmul.mubr.bf16.gmra.mxu0 %v470_v53  ;;  %1094 = vmatmul.mubr.bf16.gmra.mxu1 %v470_v53 }
 0x228   :  { %v912_v23 = vpop.f32.mrf.mxu0  ;;  %v1025_v4 = vpop.f32.mrf.mxu1 }
 0x229   :  { %v913_v61 = vadd.f32 %v912_v23, %v2236_v35  ;;  %v1026_v6 = vadd.f32 %v1025_v4, %v2238_v8 }
 0x22a   :  { %v914_v16 = vpop.f32.mrf.mxu0  ;;  %v1027_v33 = vpop.f32.mrf.mxu1 }
 0x22b   :  { %v915_v24 = vadd.f32 %v914_v16, %v2241_v46  ;;  %v1028_v47 = vadd.f32 %v1027_v33, %v2243_v57 }
 0x22c   :  { %v916_v56 = vpop.f32.mrf.mxu0  ;;  %v1029_v44 = vpop.f32.mrf.mxu1 }
 0x22d   :  { %v1458_v20 = vpack.c.bf16 %v915_v24, %v913_v61  ;;  %v1474_v11 = vpack.c.bf16 %v1028_v47, %v1026_v6  ;;  %v917_v34 = vadd.f32 %v916_v56, %v2236_v35  ;;  %v1030_v13 = vadd.f32 %v1029_v44, %v2238_v8 }
 0x22e   :  { %v918_v30 = vpop.f32.mrf.mxu0  ;;  %v1031_v52 = vpop.f32.mrf.mxu1 }
 0x22f   :  { %1200 = vst [vmem:[#allocation8] sm:$0xff] %v1458_v20  ;;  %1312 = vst [vmem:[#allocation9] sm:$0xff] %v1474_v11  ;;  %v919_v49 = vadd.f32 %v918_v30, %v2241_v46  ;;  %v1032_v50 = vadd.f32 %v1031_v52, %v2243_v57 }
 0x230   :  { %v922_v43 = vpop.f32.mrf.mxu0  ;;  %v1035_v54 = vpop.f32.mrf.mxu1 }
 0x231   :  { %v1459_v12 = vpack.c.bf16 %v919_v49, %v917_v34  ;;  %v1475_v15 = vpack.c.bf16 %v1032_v50, %v1030_v13  ;;  %v923_v5 = vadd.f32 %v922_v43, %v2236_v35  ;;  %v1036_v38 = vadd.f32 %v1035_v54, %v2238_v8 }
 0x232   :  { %v924_v1 = vpop.f32.mrf.mxu0  ;;  %v1037_v55 = vpop.f32.mrf.mxu1 }
 0x233   :  { %1201 = vst [vmem:[#allocation8 + $0x8] sm:$0xff] %v1459_v12  ;;  %1313 = vst [vmem:[#allocation9 + $0x8] sm:$0xff] %v1475_v15  ;;  %v925_v27 = vadd.f32 %v924_v1, %v2241_v46  ;;  %v1038_v19 = vadd.f32 %v1037_v55, %v2243_v57 }
 0x234   :  { %v926_v0 = vpop.f32.mrf.mxu0  ;;  %v1039_v21 = vpop.f32.mrf.mxu1 }
 0x235   :  { %v1460_v2 = vpack.c.bf16 %v925_v27, %v923_v5  ;;  %v1476_v10 = vpack.c.bf16 %v1038_v19, %v1036_v38  ;;  %v927_v18 = vadd.f32 %v926_v0, %v2236_v35  ;;  %v1040_v59 = vadd.f32 %v1039_v21, %v2238_v8 }
 0x236   :  { %v928_v26 = vpop.f32.mrf.mxu0  ;;  %v1041_v63 = vpop.f32.mrf.mxu1 }
 0x237   :  { %1202 = vst [vmem:[#allocation8 + $0x10] sm:$0xff] %v1460_v2  ;;  %1314 = vst [vmem:[#allocation9 + $0x10] sm:$0xff] %v1476_v10  ;;  %v929_v41 = vadd.f32 %v928_v26, %v2241_v46  ;;  %v1042_v62 = vadd.f32 %v1041_v63, %v2243_v57 }
 0x238   :  { %v932_v51 = vpop.f32.mrf.mxu0  ;;  %v1045_v36 = vpop.f32.mrf.mxu1 }
 0x239   :  { %v1461_v60 = vpack.c.bf16 %v929_v41, %v927_v18  ;;  %v1477_v14 = vpack.c.bf16 %v1042_v62, %v1040_v59  ;;  %v933_v31 = vadd.f32 %v932_v51, %v2236_v35  ;;  %v1046_v42 = vadd.f32 %v1045_v36, %v2238_v8 }
 0x23a   :  { %v934_v3 = vpop.f32.mrf.mxu0  ;;  %v1047_v9 = vpop.f32.mrf.mxu1 }
 0x23b   :  { %1203 = vst [vmem:[#allocation8 + $0x18] sm:$0xff] %v1461_v60  ;;  %1315 = vst [vmem:[#allocation9 + $0x18] sm:$0xff] %v1477_v14  ;;  %v935_v17 = vadd.f32 %v934_v3, %v2241_v46  ;;  %v1048_v29 = vadd.f32 %v1047_v9, %v2243_v57 }
 0x23c   :  { %v936_v32 = vpop.f32.mrf.mxu0  ;;  %v1049_v58 = vpop.f32.mrf.mxu1 }
 0x23d   :  { %v1462_v28 = vpack.c.bf16 %v935_v17, %v933_v31  ;;  %v1478_v22 = vpack.c.bf16 %v1048_v29, %v1046_v42  ;;  %v937_v25 = vadd.f32 %v936_v32, %v2236_v35  ;;  %v1050_v7 = vadd.f32 %v1049_v58, %v2238_v8 }
 0x23e   :  { %v938_v37 = vpop.f32.mrf.mxu0  ;;  %v1051_v40 = vpop.f32.mrf.mxu1 }
 0x23f   :  { %1204 = vst [vmem:[#allocation8 + $0x20] sm:$0xff] %v1462_v28  ;;  %1316 = vst [vmem:[#allocation9 + $0x20] sm:$0xff] %v1478_v22  ;;  %v939_v53 = vadd.f32 %v938_v37, %v2241_v46  ;;  %v1052_v39 = vadd.f32 %v1051_v40, %v2243_v57 }
 0x240   :  { %v942_v48 = vpop.f32.mrf.mxu0  ;;  %v1055_v45 = vpop.f32.mrf.mxu1 }
 0x241   :  { %v1463_v23 = vpack.c.bf16 %v939_v53, %v937_v25  ;;  %v1479_v4 = vpack.c.bf16 %v1052_v39, %v1050_v7  ;;  %v943_v61 = vadd.f32 %v942_v48, %v2236_v35  ;;  %v1056_v6 = vadd.f32 %v1055_v45, %v2238_v8 }
 0x242   :  { %v944_v16 = vpop.f32.mrf.mxu0  ;;  %v1057_v33 = vpop.f32.mrf.mxu1 }
 0x243   :  { %1205 = vst [vmem:[#allocation8 + $0x28] sm:$0xff] %v1463_v23  ;;  %1317 = vst [vmem:[#allocation9 + $0x28] sm:$0xff] %v1479_v4  ;;  %v945_v24 = vadd.f32 %v944_v16, %v2241_v46  ;;  %v1058_v47 = vadd.f32 %v1057_v33, %v2243_v57 }
 0x244   :  { %v946_v56 = vpop.f32.mrf.mxu0  ;;  %v1059_v44 = vpop.f32.mrf.mxu1 }
 0x245   :  { %v1464_v20 = vpack.c.bf16 %v945_v24, %v943_v61  ;;  %v1480_v11 = vpack.c.bf16 %v1058_v47, %v1056_v6  ;;  %v947_v34 = vadd.f32 %v946_v56, %v2236_v35  ;;  %v1060_v13 = vadd.f32 %v1059_v44, %v2238_v8 }
 0x246   :  { %v948_v30 = vpop.f32.mrf.mxu0  ;;  %v1061_v52 = vpop.f32.mrf.mxu1 }
 0x247   :  { %1206 = vst [vmem:[#allocation8 + $0x30] sm:$0xff] %v1464_v20  ;;  %1318 = vst [vmem:[#allocation9 + $0x30] sm:$0xff] %v1480_v11  ;;  %v949_v49 = vadd.f32 %v948_v30, %v2241_v46  ;;  %v1062_v50 = vadd.f32 %v1061_v52, %v2243_v57 }
 0x248   :  { %v952_v43 = vpop.f32.mrf.mxu0  ;;  %v1065_v54 = vpop.f32.mrf.mxu1 }
 0x249   :  { %v1465_v12 = vpack.c.bf16 %v949_v49, %v947_v34  ;;  %v1481_v15 = vpack.c.bf16 %v1062_v50, %v1060_v13  ;;  %v953_v5 = vadd.f32 %v952_v43, %v2236_v35  ;;  %v1066_v38 = vadd.f32 %v1065_v54, %v2238_v8 }
 0x24a   :  { %v954_v1 = vpop.f32.mrf.mxu0  ;;  %v1067_v55 = vpop.f32.mrf.mxu1 }
 0x24b   :  { %1207 = vst [vmem:[#allocation8 + $0x38] sm:$0xff] %v1465_v12  ;;  %1319 = vst [vmem:[#allocation9 + $0x38] sm:$0xff] %v1481_v15  ;;  %v955_v27 = vadd.f32 %v954_v1, %v2241_v46  ;;  %v1068_v19 = vadd.f32 %v1067_v55, %v2243_v57 }
 0x24c   :  { %v956_v0 = vpop.f32.mrf.mxu0  ;;  %v1069_v21 = vpop.f32.mrf.mxu1 }
 0x24d   :  { %v1466_v2 = vpack.c.bf16 %v955_v27, %v953_v5  ;;  %v1482_v10 = vpack.c.bf16 %v1068_v19, %v1066_v38  ;;  %v957_v18 = vadd.f32 %v956_v0, %v2236_v35  ;;  %v1070_v59 = vadd.f32 %v1069_v21, %v2238_v8 }
 0x24e   :  { %v958_v26 = vpop.f32.mrf.mxu0  ;;  %v1071_v63 = vpop.f32.mrf.mxu1 }
 0x24f   :  { %1208 = vst [vmem:[#allocation8 + $0x40] sm:$0xff] %v1466_v2  ;;  %1320 = vst [vmem:[#allocation9 + $0x40] sm:$0xff] %v1482_v10  ;;  %v959_v41 = vadd.f32 %v958_v26, %v2241_v46  ;;  %v1072_v62 = vadd.f32 %v1071_v63, %v2243_v57 }
 0x250   :  { %v962_v51 = vpop.f32.mrf.mxu0  ;;  %v1075_v36 = vpop.f32.mrf.mxu1 }
 0x251   :  { %v1467_v60 = vpack.c.bf16 %v959_v41, %v957_v18  ;;  %v1483_v14 = vpack.c.bf16 %v1072_v62, %v1070_v59  ;;  %v963_v31 = vadd.f32 %v962_v51, %v2236_v35  ;;  %v1076_v42 = vadd.f32 %v1075_v36, %v2238_v8 }
 0x252   :  { %v964_v3 = vpop.f32.mrf.mxu0  ;;  %v1077_v9 = vpop.f32.mrf.mxu1 }
 0x253   :  { %1209 = vst [vmem:[#allocation8 + $0x48] sm:$0xff] %v1467_v60  ;;  %1321 = vst [vmem:[#allocation9 + $0x48] sm:$0xff] %v1483_v14  ;;  %v965_v17 = vadd.f32 %v964_v3, %v2241_v46  ;;  %v1078_v29 = vadd.f32 %v1077_v9, %v2243_v57 }
 0x254   :  { %v966_v32 = vpop.f32.mrf.mxu0  ;;  %v1079_v58 = vpop.f32.mrf.mxu1 }
 0x255   :  { %v1468_v28 = vpack.c.bf16 %v965_v17, %v963_v31  ;;  %v1484_v22 = vpack.c.bf16 %v1078_v29, %v1076_v42  ;;  %v967_v25 = vadd.f32 %v966_v32, %v2236_v35  ;;  %v1080_v7 = vadd.f32 %v1079_v58, %v2238_v8 }
 0x256   :  { %v968_v37 = vpop.f32.mrf.mxu0  ;;  %v1081_v40 = vpop.f32.mrf.mxu1 }
 0x257   :  { %1210 = vst [vmem:[#allocation8 + $0x50] sm:$0xff] %v1468_v28  ;;  %1322 = vst [vmem:[#allocation9 + $0x50] sm:$0xff] %v1484_v22  ;;  %v969_v53 = vadd.f32 %v968_v37, %v2241_v46  ;;  %v1082_v39 = vadd.f32 %v1081_v40, %v2243_v57 }
 0x258   :  { %v972_v48 = vpop.f32.mrf.mxu0  ;;  %v1085_v45 = vpop.f32.mrf.mxu1 }
 0x259   :  { %v1469_v23 = vpack.c.bf16 %v969_v53, %v967_v25  ;;  %v1485_v4 = vpack.c.bf16 %v1082_v39, %v1080_v7  ;;  %v973_v61 = vadd.f32 %v972_v48, %v2236_v35  ;;  %v1086_v6 = vadd.f32 %v1085_v45, %v2238_v8 }
 0x25a   :  { %v974_v16 = vpop.f32.mrf.mxu0  ;;  %v1087_v33 = vpop.f32.mrf.mxu1 }
 0x25b   :  { %1211 = vst [vmem:[#allocation8 + $0x58] sm:$0xff] %v1469_v23  ;;  %1323 = vst [vmem:[#allocation9 + $0x58] sm:$0xff] %v1485_v4  ;;  %v975_v24 = vadd.f32 %v974_v16, %v2241_v46  ;;  %v1088_v47 = vadd.f32 %v1087_v33, %v2243_v57 }
 0x25c   :  { %v976_v56 = vpop.f32.mrf.mxu0  ;;  %v1089_v44 = vpop.f32.mrf.mxu1 }
 0x25d   :  { %v1470_v20 = vpack.c.bf16 %v975_v24, %v973_v61  ;;  %v1486_v11 = vpack.c.bf16 %v1088_v47, %v1086_v6  ;;  %v977_v34 = vadd.f32 %v976_v56, %v2236_v35  ;;  %v1090_v13 = vadd.f32 %v1089_v44, %v2238_v8 }
 0x25e   :  { %v978_v30 = vpop.f32.mrf.mxu0  ;;  %v1091_v52 = vpop.f32.mrf.mxu1 }
 0x25f   :  { %1212 = vst [vmem:[#allocation8 + $0x60] sm:$0xff] %v1470_v20  ;;  %1324 = vst [vmem:[#allocation9 + $0x60] sm:$0xff] %v1486_v11  ;;  %v979_v49 = vadd.f32 %v978_v30, %v2241_v46  ;;  %v1092_v50 = vadd.f32 %v1091_v52, %v2243_v57 }
 0x260   :  { %v982_v43 = vpop.f32.mrf.mxu0  ;;  %v1095_v54 = vpop.f32.mrf.mxu1 }
 0x261   :  { %v1471_v12 = vpack.c.bf16 %v979_v49, %v977_v34  ;;  %v1487_v15 = vpack.c.bf16 %v1092_v50, %v1090_v13  ;;  %v983_v5 = vadd.f32 %v982_v43, %v2236_v35  ;;  %v1096_v38 = vadd.f32 %v1095_v54, %v2238_v8 }
 0x262   :  { %v984_v1 = vpop.f32.mrf.mxu0  ;;  %v1097_v55 = vpop.f32.mrf.mxu1 }
 0x263   :  { %1213 = vst [vmem:[#allocation8 + $0x68] sm:$0xff] %v1471_v12  ;;  %1325 = vst [vmem:[#allocation9 + $0x68] sm:$0xff] %v1487_v15  ;;  %v985_v27 = vadd.f32 %v984_v1, %v2241_v46  ;;  %v1098_v19 = vadd.f32 %v1097_v55, %v2243_v57 }
 0x264   :  { %v986_v0 = vpop.f32.mrf.mxu0  ;;  %v1099_v21 = vpop.f32.mrf.mxu1 }
 0x265   :  { %v1472_v2 = vpack.c.bf16 %v985_v27, %v983_v5  ;;  %v1488_v10 = vpack.c.bf16 %v1098_v19, %v1096_v38  ;;  %v987_v18 = vadd.f32 %v986_v0, %v2236_v35  ;;  %v1100_v59 = vadd.f32 %v1099_v21, %v2238_v8 }
 0x266   :  { %v988_v26 = vpop.f32.mrf.mxu0  ;;  %v1101_v63 = vpop.f32.mrf.mxu1 }
 0x267   :  { %1214 = vst [vmem:[#allocation8 + $0x70] sm:$0xff] %v1472_v2  ;;  %1326 = vst [vmem:[#allocation9 + $0x70] sm:$0xff] %v1488_v10  ;;  %v989_v41 = vadd.f32 %v988_v26, %v2241_v46  ;;  %v1102_v62 = vadd.f32 %v1101_v63, %v2243_v57 }
 0x269   :  { %v1473_v51 = vpack.c.bf16 %v989_v41, %v987_v18  ;;  %v1489_v36 = vpack.c.bf16 %v1102_v62, %v1100_v59 }
 0x26b   :  { %1215 = vst [vmem:[#allocation8 + $0x78] sm:$0xff] %v1473_v51  ;;  %1327 = vst [vmem:[#allocation9 + $0x78] sm:$0xff] %v1489_v36 }
 0x26c   :  { %1698 = shalt.err (!%p1695_p5)
}
 0x26d   :  { %1339 = dma.vmem_to_hbm [thread:$0]  %s1334_s16, 2048, %s2326_s5, [#allocation4], %s1737_s29, %s1737_s29, %s1738_s30  }
 0x26e   :  { %s1707_s22 = scalar_lea.vmem %s1346_s18, 2048  ;;  %p1712_p7 = scmp.lt.s32.totalorder %s1346_s18, %s1346_s18 }
 0x26f   :  { %p1708_p6 = scmp.ne.s32.totalorder %s1346_s18, %s1707_s22  ;;  %p1713_p8 = scmp.lt.s32.totalorder %s1707_s22, %s1707_s22 }
 0x271   :  { %p1714_p9 = por %p1713_p8, %p1712_p7 }
 0x273   :  { %p1715_p10 = pnand %p1714_p9, %p1708_p6 }
 0x275   :  { %1718 = shalt.err (!%p1715_p10)
}
 0x276   :  { %1351 = dma.vmem_to_hbm [thread:$0]  %s1346_s18, 2048, %s2327_s6, [#allocation10], %s1737_s29, %s1737_s29, %s1738_s30  }
 0x277   :  { %1731 = dma.done.wait [#allocation4], 2048  }
 0x278   :  { %1732 = vsyncadd [#allocation4], 4294965248 }
 0x279   :  { %1733 = dma.done.wait [#allocation10], 2048  }
 0x27a   :  { %1734 = vsyncadd [#allocation10], 4294965248 }
 0x27b   :  { %1358 = vsyncpa [#allocation3], 1 }
 0x27c   :  { %1359 = vsyncpa [#allocation6], 1 }
 0x27d   :  { %1360 = vsyncpa [#allocation4], 1 }
 0x27e   :  { %1361 = vsyncpa [#allocation10], 1 }

</bundles_post_ra>
